<compile_context>
chip_gen: v5e
topology: v5e:2x2
jax: 0.10.0
libtpu: 0.0.40
codegen_flags: <defaults>
</compile_context>

<pallas_src>
import functools

import jax
import jax.numpy as jnp
from jax.experimental import pallas as pl
from jax.experimental.pallas import tpu as pltpu


# ----------------------------- Pallas kernel --------------------------------

def se_block_kernel(x_ref, w1t_ref, w2t_ref, o_ref, *, inv_s):
    # x_ref block: (TB, C, S_pad)  native dtype, lane-dense spatial axis
    # w1t: (C, r)  = fc1.weight.T        w2t: (r, C) = fc2.weight.T
    x = x_ref[...]                                        # native dtype, no f32 copy
    TB, C, S = x.shape

    # Global average pool over the spatial (lane) axis via an MXU ones-matmul.
    # f32 accumulation only in the pooled result, never a full-tile f32 copy.
    ones_col = jnp.ones((S, 1), dtype=x.dtype)
    pooled = jnp.dot(x.reshape(TB * C, S), ones_col,
                     preferred_element_type=jnp.float32)  # (TB*C, 1)
    pooled = pooled.reshape(TB, C) * jnp.float32(inv_s)   # (TB, C)

    # fc1 (bias=False) + ReLU, batched over the TB images in this block.
    h = jnp.dot(pooled, w1t_ref[...].astype(jnp.float32),
                preferred_element_type=jnp.float32)       # (TB, r)
    h = jnp.maximum(h, 0.0)

    # fc2 (bias=False) + sigmoid.
    g = jnp.dot(h, w2t_ref[...].astype(jnp.float32),
                preferred_element_type=jnp.float32)       # (TB, C)
    gate = jax.nn.sigmoid(g)                              # (TB, C) f32

    # Per-channel gate: broadcast along the lane-dense spatial axis, multiply
    # at the native dtype (keeps the working set small for sub-32-bit inputs).
    o_ref[...] = (x * gate[:, :, None].astype(x.dtype)).astype(o_ref.dtype)


# ----------------------------- wrapper ---------------------------------------

def _pick_tb(batch, bytes_per_image_block, vmem_block_budget):
    """Largest divisor of `batch` whose double-buffered in+out blocks fit the
    budget, preferring a grid length >= 2 so both v7x TensorCores get work."""
    # 2 buffers for the input block + 2 for the output block.
    tb_max = max(1, int(vmem_block_budget // (4 * bytes_per_image_block)))
    cap = min(tb_max, max(1, batch // 2)) if batch >= 2 else 1
    tb = 1
    for d in range(1, batch + 1):
        if batch % d == 0 and d <= cap:
            tb = d
    return tb


def se_block(x_nchw, w1, w2, *, vmem_block_budget=20 << 20):
    """x_nchw: (B, C, H, W);  w1 = fc1.weight (C//r, C);  w2 = fc2.weight (C, C//r)."""
    B, C, H, W = x_nchw.shape
    r = w1.shape[0]
    assert w1.shape == (r, C), w1.shape
    assert w2.shape == (C, r), w2.shape

    S = H * W
    S_pad = ((S + 127) // 128) * 128          # lane-dense stores (no vst.msk)
    itemsize = jnp.dtype(x_nchw.dtype).itemsize

    # Lane-dense presentation: flatten spatial dims onto the last (lane) axis,
    # zero-pad to a multiple of 128 (padding does not affect the mean because
    # we divide by the true S below).
    x2 = x_nchw.reshape(B, C, S)
    if S_pad != S:
        x2 = jnp.pad(x2, ((0, 0), (0, 0), (0, S_pad - S)))

    # Block sizing: largest batch tile that keeps double-buffered blocks under
    # the VMEM budget and keeps the grid parallel-shardable across TCs.
    bytes_per_image_block = C * S_pad * itemsize
    TB = _pick_tb(B, bytes_per_image_block, vmem_block_budget)
    grid = (B // TB,)

    # Pre-transpose the tiny FC weights on the host so the kernel does plain
    # row-major batched dots (no in-kernel transpose/copies).
    w1t = jnp.asarray(w1).T                   # (C, r)
    w2t = jnp.asarray(w2).T                   # (r, C)

    cost = pl.CostEstimate(
        flops=int(B * (2 * C * S              # pooling ones-matmul
                       + 2 * C * r            # fc1
                       + 2 * r * C            # fc2
                       + C * S)),             # gate multiply
        transcendentals=int(B * C),           # sigmoid
        bytes_accessed=int(itemsize * 2 * B * C * S + 4 * 2 * r * C),
    )

    kernel = functools.partial(se_block_kernel, inv_s=1.0 / float(S))

    out = pl.pallas_call(
        kernel,
        out_shape=jax.ShapeDtypeStruct((B, C, S_pad), x_nchw.dtype),
        grid_spec=pl.GridSpec(
            grid=grid,
            in_specs=[
                pl.BlockSpec((TB, C, S_pad), lambda b: (b, 0, 0)),
                pl.BlockSpec((C, r), lambda b: (0, 0)),   # VMEM-resident weights
                pl.BlockSpec((r, C), lambda b: (0, 0)),   # VMEM-resident weights
            ],
            out_specs=pl.BlockSpec((TB, C, S_pad), lambda b: (b, 0, 0)),
        ),
        compiler_params=pltpu.CompilerParams(
            dimension_semantics=("parallel",),
            vmem_limit_bytes=32 << 20,
        ),
        cost_estimate=cost,
    )(x2, w1t, w2t)

    if S_pad != S:
        out = out[:, :, :S]
    return out.reshape(B, C, H, W)


# ----------------------------- reference (pure JAX) ---------------------------

def se_block_reference(x_nchw, w1, w2):
    pooled = jnp.mean(x_nchw, axis=(2, 3))                  # (B, C)
    h = jnp.maximum(pooled @ w1.T, 0.0)                     # (B, r)
    gate = jax.nn.sigmoid(h @ w2.T)                         # (B, C)
    return x_nchw * gate[:, :, None, None]


# ----------------------------- main -------------------------------------------

if __name__ == "__main__":
    key = jax.random.PRNGKey(0)
    kx, k1, k2 = jax.random.split(key, 3)

    B, C, H, W = 2, 32, 16, 16        # H*W = 256 -> lane-dense spatial axis
    reduction = 8
    r = C // reduction                # = 4

    x = jax.random.normal(kx, (B, C, H, W), jnp.float32)
    w1 = 0.3 * jax.random.normal(k1, (r, C), jnp.float32)   # fc1.weight (out, in)
    w2 = 0.3 * jax.random.normal(k2, (C, r), jnp.float32)   # fc2.weight (out, in)

    out = jax.block_until_ready(se_block(x, w1, w2))
    ref = jax.block_until_ready(se_block_reference(x, w1, w2))

    assert out.shape == x.shape
    assert bool(jnp.all(jnp.isfinite(out)))
    assert jnp.allclose(out, ref, rtol=1e-4, atol=1e-5)

    print("KERNEL_OK")
</pallas_src>

<mosaic_0001>
module attributes {stable_mosaic.version = 11 : i64} {
  func.func @se_block_kernel(%arg0: i32, %arg1: memref<1x32x256xf32, #tpu.memory_space<vmem>>, %arg2: memref<32x4xf32, #tpu.memory_space<vmem>>, %arg3: memref<4x32xf32, #tpu.memory_space<vmem>>, %arg4: memref<1x32x256xf32, #tpu.memory_space<vmem>>) attributes {dimension_semantics = [#tpu.dimension_semantics<parallel>], iteration_bounds = array<i64: 2>, scalar_prefetch = 0 : i64, scratch_operands = 0 : i64, tpu.core_type = #tpu.core_type<tc>, window_params = [{transform_indices = @transform_0, window_bounds = array<i64: 1, 32, 256>}, {pipeline_mode = #tpu.pipeline_mode<synchronous>, transform_indices = @transform_1, window_bounds = array<i64: 32, 4>}, {pipeline_mode = #tpu.pipeline_mode<synchronous>, transform_indices = @transform_2, window_bounds = array<i64: 4, 32>}, {transform_indices = @transform_3, window_bounds = array<i64: 1, 32, 256>}]} {
    %c0 = arith.constant 0 : index
    %c0_0 = arith.constant 0 : index
    %c0_1 = arith.constant 0 : index
    %0 = vector.load %arg1[%c0, %c0_0, %c0_1] : memref<1x32x256xf32, #tpu.memory_space<vmem>>, vector<1x32x256xf32>
    %cst = arith.constant 1.000000e+00 : f32
    %1 = vector.broadcast %cst : f32 to vector<256x1xf32>
    %2 = vector.shape_cast %0 : vector<1x32x256xf32> to vector<32x256xf32>
    %cst_2 = arith.constant dense<0.000000e+00> : vector<32x1xf32>
    %3 = tpu.matmul %2, %1, %cst_2 {dimension_numbers = #tpu.dot_dimension_numbers<[1], [0], [0], [1], [0, 0, 1, 1], [], []>} : vector<32x256xf32>, vector<256x1xf32>, vector<32x1xf32> -> vector<32x1xf32>
    %4 = vector.shape_cast %3 : vector<32x1xf32> to vector<1x32xf32>
    %cst_3 = arith.constant 3.906250e-03 : f32
    %5 = vector.broadcast %cst_3 : f32 to vector<1x32xf32>
    %6 = arith.mulf %4, %5 : vector<1x32xf32>
    %c0_4 = arith.constant 0 : index
    %c0_5 = arith.constant 0 : index
    %7 = vector.load %arg2[%c0_4, %c0_5] : memref<32x4xf32, #tpu.memory_space<vmem>>, vector<32x4xf32>
    %cst_6 = arith.constant dense<0.000000e+00> : vector<1x4xf32>
    %8 = tpu.matmul %6, %7, %cst_6 {dimension_numbers = #tpu.dot_dimension_numbers<[1], [0], [0], [1], [0, 0, 1, 1], [], []>} : vector<1x32xf32>, vector<32x4xf32>, vector<1x4xf32> -> vector<1x4xf32>
    %cst_7 = arith.constant 0.000000e+00 : f32
    %9 = vector.broadcast %cst_7 : f32 to vector<1x4xf32>
    %10 = arith.maximumf %8, %9 : vector<1x4xf32>
    %c0_8 = arith.constant 0 : index
    %c0_9 = arith.constant 0 : index
    %11 = vector.load %arg3[%c0_8, %c0_9] : memref<4x32xf32, #tpu.memory_space<vmem>>, vector<4x32xf32>
    %cst_10 = arith.constant dense<0.000000e+00> : vector<1x32xf32>
    %12 = tpu.matmul %10, %11, %cst_10 {dimension_numbers = #tpu.dot_dimension_numbers<[1], [0], [0], [1], [0, 0, 1, 1], [], []>} : vector<1x4xf32>, vector<4x32xf32>, vector<1x32xf32> -> vector<1x32xf32>
    %13 = arith.negf %12 : vector<1x32xf32>
    %14 = math.exp %13 : vector<1x32xf32>
    %cst_11 = arith.constant 1.000000e+00 : f32
    %15 = vector.broadcast %cst_11 : f32 to vector<1x32xf32>
    %16 = arith.addf %15, %14 : vector<1x32xf32>
    %17 = arith.divf %15, %16 : vector<1x32xf32>
    %18 = vector.shape_cast %17 : vector<1x32xf32> to vector<1x32x1xf32>
    %19 = vector.broadcast %18 : vector<1x32x1xf32> to vector<1x32x256xf32>
    %20 = arith.mulf %0, %19 : vector<1x32x256xf32>
    %c0_12 = arith.constant 0 : index
    %c0_13 = arith.constant 0 : index
    %c0_14 = arith.constant 0 : index
    %21 = vector.load %arg4[%c0_12, %c0_13, %c0_14] : memref<1x32x256xf32, #tpu.memory_space<vmem>>, vector<1x32x256xf32>
    tpu.vector_store %arg4[%c0_12, %c0_13, %c0_14], %20 {strides = array<i32>} : memref<1x32x256xf32, #tpu.memory_space<vmem>>, vector<1x32x256xf32>,
    return
  }
  func.func @transform_0(%arg0: i32) -> (i32, i32, i32) {
    %c0_i32 = arith.constant 0 : i32
    %c0_i32_0 = arith.constant 0 : i32
    %c0_i32_1 = arith.constant 0 : i32
    return %arg0, %c0_i32, %c0_i32_0 : i32, i32, i32
  }
  func.func @transform_1(%arg0: i32) -> (i32, i32) {
    %c0_i32 = arith.constant 0 : i32
    %c0_i32_0 = arith.constant 0 : i32
    %c0_i32_1 = arith.constant 0 : i32
    return %c0_i32, %c0_i32_0 : i32, i32
  }
  func.func @transform_2(%arg0: i32) -> (i32, i32) {
    %c0_i32 = arith.constant 0 : i32
    %c0_i32_0 = arith.constant 0 : i32
    %c0_i32_1 = arith.constant 0 : i32
    return %c0_i32, %c0_i32_0 : i32, i32
  }
  func.func @transform_3(%arg0: i32) -> (i32, i32, i32) {
    %c0_i32 = arith.constant 0 : i32
    %c0_i32_0 = arith.constant 0 : i32
    %c0_i32_1 = arith.constant 0 : i32
    return %arg0, %c0_i32, %c0_i32_0 : i32, i32, i32
  }
}

</mosaic_0001>

<bundles_post_ra>
// kernel: tpu_custom_call.1
= control target key start
LH: loop header
LB: loop body
LE: loop exit
PB: predicated region body
PF: predicated region fallthrough
CT: control target
= control target key end

     0   :  { %8 = vsyncpa [#allocation3], 0  ;;  %s989_s0 = inlined_call_operand.hbm [shape: f32[2,32,256], index: 0, kind: input, shape index: {}]   ;;  %s990_s1 = inlined_call_operand.vmem [shape: f32[32,4], index: 1, kind: input, shape index: {}]   ;;  %s991_s2 = inlined_call_operand.vmem [shape: f32[4,32], index: 2, kind: input, shape index: {}]   ;;  %s992_s3 = inlined_call_operand.hbm [shape: f32[2,32,256], index: 3, kind: output, shape index: {}]  }
   0x1   :  { %10 = vsyncpa [#allocation3 + $0x1], 0 }
   0x2   :  { %11 = vsyncpa [#allocation4], 0 }
   0x3   :  { %13 = vsyncpa [#allocation4 + $0x1], 0  ;;  %s737_s12 = smov 0   ;;  %s739_s13 = smov 0  }
   0x4   :  { %s741_s14 = smov 0   ;;  %s743_s15 = smov 0  }
   0x5 LB: > { %s758_s16 = sadd.s32 4294967295, %s709_s15   ;;  %s498_s17 = sadd.s32 4294967294, %s709_s15   ;;  %s709_s15 = sphi %s743_s15, %s1002_s15   ;;  %s705_s14 = sphi %s741_s14, %s1001_s14   ;;  %s701_s13 = sphi %s739_s13, %s1000_s13   ;;  %s697_s12 = sphi %s737_s12, %s999_s12  }
   0x6   : > { %s762_s18 = sadd.s32 1, %s709_s15   ;;  %s26_s19 = sadd.s32 1, %s705_s14 }
   0x7   : > { %s23_s20 = ssub.s32 %s709_s15, %s762_s18  ;;  %p33_p0 = scmp.ne.s32.totalorder %s705_s14, %s701_s13 }
   0x8   : > { %p24_p1 = scmp.eq.s32.totalorder %s23_s20, 0  ;;  %p34_p2 = scmp.eq.s32.totalorder %s709_s15, 0 }
   0x9   : > { %p39_p3 = scmp.ne.s32.totalorder %s701_s13, %s697_s12  ;;  %p40_p4 = scmp.eq.s32.totalorder %s758_s16, 0 }
   0xa   : > { %s774_s21 = scalar_select %p24_p1, %s705_s14, %s26_s19  }
   0xb   : > { %p776_p5 = por %p34_p2, %p33_p0  ;;  %p780_p6 = por %p40_p4, %p39_p3 }
   0xc   : > { %p105_p7 = scmp.eq.s32.totalorder %s758_s16, 1  ;;  %p111_p8 = scmp.eq.s32.totalorder %s498_s17, 1 }
   0xd   : > { %p562_p10 = scmp.lt.s32.totalorder %s709_s15, 2  ;;  %s137_s26 = sand.u32 1, %s705_s14  }
   0xe   : > { %p787_p11 = por %p105_p7, %p33_p0  ;;  %p791_p12 = por %p111_p8, %p39_p3 }
   0xf   : > { %s516_s27 = sshll.u32 %s709_s15, 6  ;;  %s501_s28 = sshll.u32 %s137_s26, 6 }
  0x10   : > { %s146_s4 = scalar_lea.hbm %s989_s0, %s516_s27  ;;  %s141_s6 = scalar_lea.vmem [#allocation2], %s501_s28 }
  0x11   : > { %s147_s5 = sshll.u32 %s146_s4, 4  ;;  %s149_s7 = sshll.u32 %s141_s6, 4  ;;  %s148_s5 = int_to_ptr.hbm [resolvable:$true] %s147_s5  ;;  %s150_s7 = int_to_ptr.vmem [resolvable:$true] %s149_s7 }
  0x12   : > { %p802_p13 = pnand %p562_p10, %p776_p5  ;;  %p504_p0 = scmp.ge.s32.totalorder %s709_s15, 1 }
  0x13   : > { %p157_p1 = scmp.lt.s32.totalorder %s709_s15, 3  ;;  %s138_s9 = scalar_lea.sflag [#allocation3], %s137_s26 }
  0x14   : > { %s613_s10 = sshra.s32 %s148_s5, 4  ;;  %p617_p3 = pneg %p802_p13  ;;  %s614_s10 = int_to_ptr.hbm [resolvable:$true] %s613_s10 }
  0x15   : > { %s615_s11 = scalar_lea.hbm %s614_s10, 64  ;;  %s620_s20 = scalar_lea.hbm %s989_s0, 128 }
  0x16   : > { %p616_p2 = scmp.ne.s32.totalorder %s614_s10, %s615_s11  ;;  %p621_p5 = scmp.lt.s32.totalorder %s614_s10, %s989_s0 }
  0x17   : > { %p622_p8 = scmp.lt.s32.totalorder %s620_s20, %s615_s11 }
  0x18   : > { %p618_p4 = pnand %p617_p3, %p616_p2 }
  0x19   : > { %p623_p10 = por %p622_p8, %p621_p5 }
  0x1a   : > { %p619_p7 = pneg %p618_p4 }
  0x1c   : > { %p624_p9 = pnand %p623_p10, %p619_p7 }
  0x1e   : > { %627 = shalt.err (!%p624_p9)
}
  0x1f   : > { %s711_s26 = smov 256   ;;  %s712_s28 = smov 16  }
  0x20   : > { %557 = dma.hbm_to_vmem [thread:$0]  (!%p802_p13), %s148_s5, 1024, %s150_s7, %s138_s9, %s711_s26, %s711_s26, %s712_s28  }
  0x21   : > { %p158_p2 = pnand %p504_p0, %p157_p1 }
  0x22   : > { %s823_s29 = sand.u32 (!%p158_p2), 1, %s701_s13  }
  0x23   : > { %161 = sbr.rel (%p158_p2) target bundleno = 765 (0x2fd), region = 32  ;;  %s505_s30 = sshll.u32 (!%p158_p2), %s823_s29, 6 }
  0x24   : > { %s164_s4 = scalar_lea.sflag (!%p158_p2), [#allocation3], %s823_s29  ;;  %s829_s6 = scalar_lea.vmem (!%p158_p2), [#allocation2], %s505_s30 }
  0x28   : > { %688 = dma.done.wait (%p780_p6), %s164_s4, 1024  }
  0x29   : > { %690 = vsyncadd (%p780_p6), %s164_s4, 4294966272  ;;  %v713_v0 = vmov 1.0   ;;  %v894_v1 = vld [vmem:[%s829_s6] sm:$0xff]  ;;  %v897_v2 = vld [vmem:[%s829_s6 + $0x8] sm:$0xff]  ;;  %v714_v9 = vmov 0   ;;  %vm325_vm0 = vcmask 1043456   ;;  %v281_v32 = vlaneseq }
  0x2a   : > { %199 = vmatpush.msra.mxu0 %v713_v0  ;;  %228 = vmatpush.msra.mxu1 %v713_v0  ;;  %v904_v3 = vld [vmem:[%s829_s6 + $0x20] sm:$0xff]  ;;  %v907_v4 = vld [vmem:[%s829_s6 + $0x38] sm:$0xff]  ;;  %v916_v5 = vld [vmem:[%s829_s6 + $0x10] sm:$0xff]  ;;  %vm286_vm1 = vcmask 130112   ;;  %vm290_vm2 = vcmask 195712   ;;  %vm294_vm3 = vcmask 261312  }
  0x2b   : > { %518 = vmatpush.msra.mxu3 %v713_v0  ;;  %534 = vmatpush.msra.mxu2 %v713_v0  ;;  %v919_v6 = vld [vmem:[%s829_s6 + $0x18] sm:$0xff]  ;;  %v922_v7 = vld [vmem:[%s829_s6 + $0x30] sm:$0xff]  ;;  %v928_v8 = vld [vmem:[%s829_s6 + $0x28] sm:$0xff]  ;;  %v282_v33 = vand.u32 127, %v281_v32  ;;  %vm296_vm4 = vcmask 261120   ;;  %vm321_vm5 = vcmask 31744  }
  0x2c   : > { %200 = vmatpush.msra.mxu0 %v713_v0  ;;  %229 = vmatpush.msra.mxu1 %v713_v0  ;;  %v264_v26 = vld [vmem:[%s990_s1 + $0x18] sm:$0xff]  ;;  %v263_v27 = vld [vmem:[%s990_s1 + $0x10] sm:$0xff]  ;;  %v262_v28 = vld [vmem:[%s990_s1 + $0x8] sm:$0xff]  ;;  %v370_v49 = vshrl.u32 %v281_v32, 7  ;;  %s190_s22 = scalar_lea.vmem [#allocation5], %s505_s30  ;;  %s517_s27 = sshll.u32 %s758_s16, 6 }
  0x2d   : > { %519 = vmatpush.msra.mxu3 %v713_v0  ;;  %535 = vmatpush.msra.mxu2 %v713_v0  ;;  %v261_v29 = vld [vmem:[%s990_s1] sm:$0xff]  ;;  %v284_v35 = vadd.s32 4294967288, %v282_v33  ;;  %v288_v37 = vadd.s32 4294967280, %v282_v33  ;;  %v292_v39 = vadd.s32 4294967272, %v282_v33  ;;  %s421_s4 = scalar_lea.hbm %s992_s3, %s517_s27  ;;  %s422_s6 = sshll.u32 %s190_s22, 4  ;;  %s423_s6 = int_to_ptr.vmem [resolvable:$true] %s422_s6 }
  0x2e   : > { %201 = vmatpush.msra.mxu0 %v713_v0  ;;  %230 = vmatpush.msra.mxu1 %v713_v0  ;;  %v320_v30 = vld [vmem:[%s991_s2] sm:$0xf]  ;;  %v389_v50 = vadd.s32 24, %v370_v49  ;;  %v383_v51 = vadd.s32 16, %v370_v49  ;;  %s424_s23 = sshll.u32 %s421_s4, 4  ;;  %s410_s16 = scalar_lea.sflag [#allocation4], %s823_s29  ;;  %s425_s23 = int_to_ptr.hbm [resolvable:$true] %s424_s23 }
  0x2f   : > { %520 = vmatpush.msra.mxu3 %v713_v0  ;;  %536 = vmatpush.msra.mxu2 %v713_v0  ;;  %s657_s30 = sshra.s32 %s425_s23, 4  ;;  %s663_s9 = scalar_lea.hbm %s992_s3, 128  ;;  %s658_s30 = int_to_ptr.hbm [resolvable:$true] %s657_s30 }
  0x30   : > { %202 = vmatpush.msra.mxu0 %v713_v0  ;;  %231 = vmatpush.msra.mxu1 %v713_v0  ;;  %s659_s5 = scalar_lea.hbm %s658_s30, 64  ;;  %p664_p0 = scmp.lt.s32.totalorder %s658_s30, %s992_s3 }
  0x31   : > { %521 = vmatpush.msra.mxu3 %v713_v0  ;;  %537 = vmatpush.msra.mxu2 %v713_v0  ;;  %p660_p6 = scmp.ne.s32.totalorder %s658_s30, %s659_s5  ;;  %p665_p1 = scmp.lt.s32.totalorder %s663_s9, %s659_s5 }
  0x32   : > { %203 = vmatpush.msra.mxu0 %v713_v0  ;;  %232 = vmatpush.msra.mxu1 %v713_v0 }
  0x33   : > { %522 = vmatpush.msra.mxu3 %v713_v0  ;;  %538 = vmatpush.msra.mxu2 %v713_v0  ;;  %p661_p9 = pnand %p660_p6, %p787_p11  ;;  %p666_p3 = por %p665_p1, %p664_p0 }
  0x34   : > { %204 = vmatpush.msra.mxu0 %v713_v0  ;;  %233 = vmatpush.msra.mxu1 %v713_v0 }
  0x35   : > { %523 = vmatpush.msra.mxu3 %v713_v0  ;;  %539 = vmatpush.msra.mxu2 %v713_v0  ;;  %p662_p13 = pneg %p661_p9 }
  0x36   : > { %205 = vmatpush.msra.mxu0 %v713_v0  ;;  %234 = vmatpush.msra.mxu1 %v713_v0 }
  0x37   : > { %524 = vmatpush.msra.mxu3 %v713_v0  ;;  %540 = vmatpush.msra.mxu2 %v713_v0  ;;  %p667_p4 = pnand %p666_p3, %p662_p13 }
  0x38   : > { %206 = vmatpush.msra.mxu0 %v713_v0  ;;  %235 = vmatpush.msra.mxu1 %v713_v0 }
  0x39   : > { %525 = vmatpush.msra.mxu3 %v713_v0  ;;  %541 = vmatpush.msra.mxu2 %v713_v0 }
  0x3a   : > { %207 = vmatpush.msra.mxu0 %v713_v0  ;;  %236 = vmatpush.msra.mxu1 %v713_v0 }
  0x3b   : > { %526 = vmatpush.msra.mxu3 %v713_v0  ;;  %542 = vmatpush.msra.mxu2 %v713_v0 }
  0x3c   : > { %208 = vmatpush.msra.mxu0 %v713_v0  ;;  %237 = vmatpush.msra.mxu1 %v713_v0 }
  0x3d   : > { %527 = vmatpush.msra.mxu3 %v713_v0  ;;  %543 = vmatpush.msra.mxu2 %v713_v0 }
  0x3e   : > { %209 = vmatpush.msra.mxu0 %v713_v0  ;;  %238 = vmatpush.msra.mxu1 %v713_v0 }
  0x3f   : > { %528 = vmatpush.msra.mxu3 %v713_v0  ;;  %544 = vmatpush.msra.mxu2 %v713_v0 }
  0x40   : > { %210 = vmatpush.msra.mxu0 %v713_v0  ;;  %239 = vmatpush.msra.mxu1 %v713_v0 }
  0x41   : > { %529 = vmatpush.msra.mxu3 %v713_v0  ;;  %545 = vmatpush.msra.mxu2 %v713_v0 }
  0x42   : > { %211 = vmatpush.msra.mxu0 %v713_v0  ;;  %240 = vmatpush.msra.mxu1 %v713_v0 }
  0x43   : > { %530 = vmatpush.msra.mxu3 %v713_v0  ;;  %546 = vmatpush.msra.mxu2 %v713_v0 }
  0x44   : > { %212 = vmatpush.msra.mxu0 %v713_v0  ;;  %241 = vmatpush.msra.mxu1 %v713_v0 }
  0x45   : > { %531 = vmatpush.msra.mxu3 %v713_v0  ;;  %547 = vmatpush.msra.mxu2 %v713_v0 }
  0x46   : > { %213 = vmatpush.msra.mxu0 %v713_v0  ;;  %242 = vmatpush.msra.mxu1 %v713_v0 }
  0x47   : > { %532 = vmatpush.msra.mxu3 %v713_v0  ;;  %548 = vmatpush.msra.mxu2 %v713_v0 }
  0x48   : > { %214 = vmatpush.msra.mxu0 %v713_v0  ;;  %243 = vmatpush.msra.mxu1 %v713_v0 }
  0x49   : > { %215 = vmatmul.f32.vlgmr.msra.gmra.mxu0 %v894_v1  ;;  %244 = vmatmul.f32.vlgmr.msra.gmra.mxu1 %v897_v2 }
  0x4a   : > { %533 = vmatpush.msra.mxu3 %v713_v0  ;;  %549 = vmatpush.msra.mxu2 %v713_v0 }
  0x4b   : > { %221 = vmatmul.f32.vlgmr.msra.gmra.mxu3 %v904_v3  ;;  %253 = vmatmul.f32.vlgmr.msra.gmra.mxu2 %v907_v4 }
  0x4c   : > { %602 = vset.pattern.permute.xlu0 %v714_v9  ;;  %603 = vset.pattern.permute.xlu1 %v714_v9 }
  0x4d   : > { %311 = vmatpush.msrb.mxu2 %v264_v26  ;;  %508 = vmatpush.msk.msrb.mxu3 %vm325_vm0, %v320_v30 }
  0x4e   : > { %604 = vset.pattern.permute.xlu2 %v370_v49 }
  0x4f   : > { %312 = vmatpush.msrb.mxu2 %v263_v27 }
  0x51   : > { %218 = vmatmul.f32.gmra.mxu0 %v916_v5  ;;  %247 = vmatmul.f32.gmra.mxu1 %v919_v6 }
  0x52   : > { %313 = vmatpush.msrb.mxu2 %v262_v28 }
  0x53   : > { %224 = vmatmul.f32.gmra.mxu3 %v922_v7 }
  0x54   : > { %314 = vmatpush.msrb.mxu2 %v261_v29 }
  0x59   : > { %250 = vmatmul.f32.gmra.mxu1 %v928_v8 }
  0xc6   : > { %v216_v10 = vpop.f32.mrf.mxu0  ;;  %v245_v11 = vpop.f32.mrf.mxu1 }
  0xc7   : > { %v246_v12 = vadd.f32 %v245_v11, %v216_v10  ;;  %v377_v11 = vadd.s32 8, %v370_v49 }
  0xc9   : > { %v257_v13 = vmul.f32 0.00390625, %v246_v12 }
  0xcb   : > { %270 = vperm.xlu0 %602, %v257_v13  }
  0xce   : > { %v219_v14 = vpop.f32.mrf.mxu0  ;;  %v248_v15 = vpop.f32.mrf.mxu1 }
  0xcf   : > { %v249_v16 = vadd.f32 %v248_v15, %v219_v14  ;;  %v222_v17 = vpop.f32.mrf.mxu3  ;;  %v254_v22 = vpop.f32.mrf.mxu2 }
  0xd1   : > { %v258_v18 = vmul.f32 0.00390625, %v249_v16 }
  0xd3   : > { %273 = vperm.xlu0 %602, %v258_v18  }
  0xd6   : > { %v251_v19 = vpop.f32.mrf.mxu1 }
  0xd7   : > { %v252_v20 = vadd.f32 %v251_v19, %v222_v17  ;;  %v225_v21 = vpop.f32.mrf.mxu3 }
  0xd8   : > { %v255_v24 = vadd.f32 %v254_v22, %v225_v21 }
  0xd9   : > { %v259_v23 = vmul.f32 0.00390625, %v252_v20 }
  0xda   : > { %v260_v25 = vmul.f32 0.00390625, %v255_v24 }
  0xdb   : > { %276 = vperm.xlu1 %603, %v259_v23   ;;  %606 = vset.pattern.permute.xlu0 %v383_v51 }
  0xe3   : > { %279 = vperm.xlu1 %603, %v260_v25  }
  0xeb   : > { %607 = vset.pattern.permute.xlu1 %v389_v50 }
 0x13d   : > { %v271_v31 = vpop.permute.xlu0 %270 }
 0x13e   : > { %v283_v41 = vperm.slane %v271_v31, %v282_v33 }
 0x145   : > { %v274_v36 = vpop.permute.xlu0 %273 }
 0x146   : > { %v285_v38 = vperm.slane %v274_v36, %v284_v35 }
 0x148   : > { %v287_v43 = vsel %vm286_vm1, %v285_v38, %v283_v41 }
 0x14d   : > { %v277_v34 = vpop.permute.xlu1 %276 }
 0x14e   : > { %v289_v40 = vperm.slane %v277_v34, %v288_v37 }
 0x150   : > { %v291_v45 = vsel %vm290_vm2, %v289_v40, %v287_v43 }
 0x155   : > { %v280_v42 = vpop.permute.xlu1 %279 }
 0x156   : > { %v293_v44 = vperm.slane %v280_v42, %v292_v39 }
 0x158   : > { %v295_v46 = vsel %vm294_vm3, %v293_v44, %v291_v45 }
 0x159   : > { %507 = vmatmul.msk.f32.vlgmr.msrb.gmra.mxu2 %vm296_vm4, %v295_v46 }
 0x1dc   : > { %v316_v47 = vpop.f32.mrf.mxu2 }
 0x1dd   : > { %v319_v48 = vmax.f32 %v316_v47, 0.0 }
 0x1df   : > { %509 = vmatmul.msk.f32.vlgmr.msrb.gmra.mxu3 %vm321_vm5, %v319_v48 }
 0x262   : > { %v346_v52 = vpop.f32.mrf.mxu3 }
 0x263   : > { %v510_v53 = vmul.f32 -1.442695, %v346_v52 }
 0x265   : > { %609 = vpow2.f32 %v510_v53 }
 0x26b   : > { %v610_v54 = vpop.eup %609 }
 0x26c   : > { %v352_v55 = vadd.f32 1.0, %v610_v54 }
 0x26e   : > { %611 = vrcp.f32 %v352_v55  ;;  %v364_v59 = vand.u32 2147483648, %v352_v55  ;;  %v362_v61 = vand.u32 2147483647, %v352_v55  ;;  %vm358_vm7 = vweird.f32 %v352_v55 }
 0x270   : > { %v365_v63 = vor.u32 1.1754944e-38, %v364_v59  ;;  %vm363_vm9 = vcmp.eq.f32.partialorder %v362_v61, 8.507059e+37 }
 0x274   : > { %v612_v56 = vpop.eup %611 }
 0x275   : > { %v354_v57 = vmul.f32 %v612_v56, %v352_v55  ;;  %vm359_vm6 = vweird.f32 %v612_v56 }
 0x276   : > { %vm360_vm8 = vmor %vm358_vm7, %vm359_vm6 }
 0x277   : > { %v355_v58 = vsub.f32 1.0, %v354_v57 }
 0x279   : > { %v356_v60 = vmul.f32 %v612_v56, %v355_v58 }
 0x27b   : > { %v357_v62 = vadd.f32 %v612_v56, %v356_v60 }
 0x27d   : > { %v361_v0 = vsel %vm360_vm8, %v612_v56, %v357_v62 }
 0x27e   : > { %v366_v9 = vsel %vm363_vm9, %v365_v63, %v361_v0 }
 0x27f   : > { %v368_v10 = vperm.slane %v366_v9, 0 }
 0x281   : > { %391 = vperm.xlu1 %607, %v368_v10   ;;  %385 = vperm.xlu0 %606, %v368_v10  }
 0x282   : > { %373 = vperm.xlu2 %604, %v368_v10  }
 0x289   : > { %608 = vset.pattern.permute.xlu0 %v389_v50 }
 0x28a   : > { %605 = vset.pattern.permute.xlu2 %v377_v11 }
 0x292   : > { %379 = vperm.xlu2 %605, %v368_v10  }
 0x2dc   : > { %v374_v12 = vpop.permute.xlu2 %373 }
 0x2dd   : > { %v393_v13 = vmul.f32 %v374_v12, %v894_v1  ;;  %v394_v14 = vmul.f32 %v374_v12, %v897_v2 }
 0x2df   : > { %401 = vst [vmem:[%s190_s22] sm:$0xff] %v393_v13 }
 0x2e0   : > { %402 = vst [vmem:[%s190_s22 + $0x8] sm:$0xff] %v394_v14 }
 0x2ec   : > { %v380_v15 = vpop.permute.xlu2 %379 }
 0x2ed   : > { %v395_v16 = vmul.f32 %v380_v15, %v916_v5  ;;  %v396_v17 = vmul.f32 %v380_v15, %v919_v6 }
 0x2ef   : > { %403 = vst [vmem:[%s190_s22 + $0x10] sm:$0xff] %v395_v16 }
 0x2f0   : > { %404 = vst [vmem:[%s190_s22 + $0x18] sm:$0xff] %v396_v17 }
 0x2f3   : > { %v392_v1 = vpop.permute.xlu1 %391  ;;  %v386_v2 = vpop.permute.xlu0 %385 }
 0x2f4   : > { %v399_v18 = vmul.f32 %v392_v1, %v922_v7  ;;  %v400_v19 = vmul.f32 %v392_v1, %v907_v4  ;;  %v397_v5 = vmul.f32 %v386_v2, %v904_v3  ;;  %v398_v6 = vmul.f32 %v386_v2, %v928_v8 }
 0x2f6   : > { %407 = vst [vmem:[%s190_s22 + $0x30] sm:$0xff] %v399_v18 }
 0x2f7   : > { %408 = vst [vmem:[%s190_s22 + $0x38] sm:$0xff] %v400_v19 }
 0x2f8   : > { %405 = vst [vmem:[%s190_s22 + $0x20] sm:$0xff] %v397_v5 }
 0x2f9   : > { %406 = vst [vmem:[%s190_s22 + $0x28] sm:$0xff] %v398_v6 }
 0x2fa   : > { %670 = shalt.err (!%p667_p4)
}
 0x2fb   : > { %s715_s29 = smov 256   ;;  %s716_s17 = smov 16  }
 0x2fc   : > { %552 = dma.vmem_to_hbm [thread:$0]  (%p787_p11), %s423_s6, 1024, %s425_s23, %s410_s16, %s715_s29, %s715_s29, %s716_s17  }
 0x2fd PF: > { %s439_s19 = sand.u32 1, %s697_s12   ;;  %p998_p7 = scmp.ge.s32.totalorder %s709_s15, 2 }
 0x2fe   : > { %s440_s20 = scalar_lea.sflag [#allocation4], %s439_s19 }
 0x2ff   : > { %p559_p5 = pnand %p998_p7, %p791_p12 }
 0x301   : > { %p560_p8 = pneg %p559_p5 }
 0x303   : > { %692 = dma.done.wait (%p560_p8), %s440_s20, 1024  }
 0x304   : > { %694 = vsyncadd (%p560_p8), %s440_s20, 4294966272  ;;  %p16_p10 = scmp.ge.s32.totalorder %s762_s18, 4   ;;  %s999_s12 = smov %s701_s13 }
 0x305   : > { %s1000_s13 = smov %s705_s14  ;;  %s1001_s14 = smov %s774_s21 }
 0x306   : > { %s1002_s15 = smov %s762_s18  ;;  %18 = sbr.rel (!%p16_p10) target bundleno = 5 (0x5), region = 77 }
 0x30b   :  { %446 = vsyncpa [#allocation3], 1 }
 0x30c   :  { %448 = vsyncpa [#allocation3 + $0x1], 1 }
 0x30d   :  { %449 = vsyncpa [#allocation4], 1 }
 0x30e   :  { %451 = vsyncpa [#allocation4 + $0x1], 1 }

</bundles_post_ra>
